<compile_context>
chip_gen: v7x
topology: tpu7x:2x2x1
jax: 0.10.0
libtpu: 0.0.40
codegen_flags: <defaults>
</compile_context>

<pallas_src>
import math

import jax
import jax.numpy as jnp
from jax.experimental import pallas as pl
from jax.experimental.pallas import tpu as pltpu


SMOOTH = 1.0
WEIGHT_DICE = (1.0, 1.0)   # axis=None -> only weight_dice[0] is used
BINARY = True

LANES = 128
SUBLANE_MULT = 16          # multiple-of-16 rows keeps bf16 target blocks tile-aligned
MAX_TILE_ROWS = 4096       # 4096 x 128 x 4 B = 2 MiB f32 block per input
NUM_SHARDS = 2             # leading "parallel" grid axis (2 TCs on v7x)


def _round_up(x, m):
    return ((x + m - 1) // m) * m


def dice_ce_partial_kernel(p_ref, t_ref, acc_ref):
    """Stream one (TILE_R, 128) tile; accumulate (8,128) partial sums for
    [intersection, sum(p)+sum(t), bce_sum] into the resident output block."""
    @pl.when(pl.program_id(1) == 0)
    def _init():
        acc_ref[...] = jnp.zeros_like(acc_ref)

    p = p_ref[...].astype(jnp.float32)
    t = t_ref[...].astype(jnp.float32)

    # Fold rows into (G, 8, 128): per-tile accumulation is pure vreg-wise VPU
    # adds, the only cross-lane reduce happens once in the wrapper.
    p3 = p.reshape(-1, 8, LANES)
    t3 = t.reshape(-1, 8, LANES)

    inter = jnp.sum(p3 * t3, axis=0)
    sum_pt = jnp.sum(p3 + t3, axis=0)

    # Binary targets (t in {0,1}): one EUP log per element instead of two.
    # Zero padding (p=0, t=0) contributes -log(1) = 0 to the BCE sum.
    sel = jnp.where(t3 > 0.5, p3, 1.0 - p3)
    log_sel = jnp.maximum(jnp.log(sel), -100.0)   # torch clamps log at -100
    bce = jnp.sum(-log_sel, axis=0)

    acc_ref[0, 0, :, :] += inter
    acc_ref[0, 1, :, :] += sum_pt
    acc_ref[0, 2, :, :] += bce


@jax.jit
def dice_ce_loss(inputs, targets):
    """DiceCELoss(binary=True, smooth=1, axis=None, weight_dice=(1,1)).forward."""
    assert inputs.shape == targets.shape
    n_true = float(math.prod(inputs.shape))   # true element count for BCE mean

    p = inputs.reshape(-1)
    if not jnp.issubdtype(p.dtype, jnp.floating):
        p = p.astype(jnp.float32)
    # Binary targets are exactly representable in bf16 -> 2 B/elem of HBM traffic.
    t = targets.reshape(-1).astype(jnp.bfloat16)

    total = p.shape[0]
    rows = pl.cdiv(total, LANES)
    rows_per_shard = pl.cdiv(rows, NUM_SHARDS)
    tile_rows = min(MAX_TILE_ROWS, _round_up(rows_per_shard, SUBLANE_MULT))
    tiles_per_shard = pl.cdiv(rows_per_shard, tile_rows)
    padded_rows = NUM_SHARDS * tiles_per_shard * tile_rows
    padded_total = padded_rows * LANES

    # Zero padding contributes nothing to any of the partial sums.
    p2d = jnp.pad(p, (0, padded_total - total)).reshape(padded_rows, LANES)
    t2d = jnp.pad(t, (0, padded_total - total)).reshape(padded_rows, LANES)

    in_map = lambda s, i: (s * tiles_per_shard + i, 0)
    out_map = lambda s, i: (s, 0, 0, 0)

    partials = pl.pallas_call(
        dice_ce_partial_kernel,
        out_shape=jax.ShapeDtypeStruct((NUM_SHARDS, 3, 8, LANES), jnp.float32),
        grid=(NUM_SHARDS, tiles_per_shard),
        in_specs=[
            pl.BlockSpec((tile_rows, LANES), in_map),
            pl.BlockSpec((tile_rows, LANES), in_map),
        ],
        out_specs=pl.BlockSpec((1, 3, 8, LANES), out_map),
        compiler_params=pltpu.CompilerParams(
            dimension_semantics=("parallel", "arbitrary")),
        cost_estimate=pl.CostEstimate(
            flops=int(8 * padded_total),
            transcendentals=int(padded_total),
            bytes_accessed=int(p2d.size * p2d.dtype.itemsize
                               + t2d.size * t2d.dtype.itemsize
                               + NUM_SHARDS * 3 * 8 * LANES * 4),
        ),
    )(p2d, t2d)

    # Epilogue (scalar math) in plain JAX: combine the two per-core partials.
    sums = jnp.sum(partials, axis=(0, 2, 3))          # (3,)
    intersection, sum_pt, bce_sum = sums[0], sums[1], sums[2]

    dice = (2.0 * intersection + SMOOTH) / (sum_pt + SMOOTH)
    dice_loss = 1.0 - dice
    bce_mean = bce_sum / n_true

    w0 = WEIGHT_DICE[0]
    return (w0 * dice_loss) / (1.0 + w0) + bce_mean


def dice_ce_loss_ref(inputs, targets):
    p = inputs.reshape(-1).astype(jnp.float32)
    t = targets.reshape(-1).astype(jnp.float32)
    intersection = jnp.sum(p * t)
    dice = (2.0 * intersection + SMOOTH) / (jnp.sum(p) + jnp.sum(t) + SMOOTH)
    dice_loss = 1.0 - dice
    bce = jnp.mean(-(t * jnp.log(p) + (1.0 - t) * jnp.log(1.0 - p)))
    return (WEIGHT_DICE[0] * dice_loss) / (1.0 + WEIGHT_DICE[0]) + bce


if __name__ == "__main__":
    key = jax.random.PRNGKey(0)
    k1, k2 = jax.random.split(key)
    B, C, H, W = 2, 4, 16, 16
    logits = jax.random.normal(k1, (B, C, H, W), dtype=jnp.float32)
    inputs = jax.nn.sigmoid(logits)                      # probabilities in (0,1)
    targets = (jax.random.uniform(k2, (B, C, H, W)) > 0.5).astype(jnp.float32)

    loss = dice_ce_loss(inputs, targets)
    jax.block_until_ready(loss)

    ref = dice_ce_loss_ref(inputs, targets)
    if not jnp.allclose(loss, ref, rtol=1e-5, atol=1e-5):
        raise AssertionError(f"mismatch: kernel={loss} ref={ref}")

    print("KERNEL_OK")
</pallas_src>

<mosaic_0001>
module attributes {stable_mosaic.version = 11 : i64} {
  func.func @dice_ce_partial_kernel(%arg0: i32, %arg1: i32, %arg2: memref<16x128xf32, #tpu.memory_space<vmem>>, %arg3: memref<16x128xbf16, #tpu.memory_space<vmem>>, %arg4: memref<1x3x8x128xf32, #tpu.memory_space<vmem>>) attributes {dimension_semantics = [#tpu.dimension_semantics<parallel>, #tpu.dimension_semantics<arbitrary>], iteration_bounds = array<i64: 2, 1>, scalar_prefetch = 0 : i64, scratch_operands = 0 : i64, tpu.core_type = #tpu.core_type<tc>, window_params = [{transform_indices = @transform_0, window_bounds = array<i64: 16, 128>}, {transform_indices = @transform_1, window_bounds = array<i64: 16, 128>}, {transform_indices = @transform_2, window_bounds = array<i64: 1, 3, 8, 128>}]} {
    %c0_i32 = arith.constant 0 : i32
    %0 = arith.cmpi eq, %arg1, %c0_i32 : i32
    %1 = arith.extui %0 : i1 to i32
    %c0_i32_0 = arith.constant 0 : i32
    %2 = arith.cmpi ne, %1, %c0_i32_0 : i32
    scf.if %2 {
      %cst_32 = arith.constant 0.000000e+00 : f32
      %41 = vector.broadcast %cst_32 : f32 to vector<1x3x8x128xf32>
      %c0_33 = arith.constant 0 : index
      %c0_34 = arith.constant 0 : index
      %c0_35 = arith.constant 0 : index
      %c0_36 = arith.constant 0 : index
      %42 = vector.load %arg4[%c0_33, %c0_34, %c0_35, %c0_36] : memref<1x3x8x128xf32, #tpu.memory_space<vmem>>, vector<1x3x8x128xf32>
      tpu.vector_store %arg4[%c0_33, %c0_34, %c0_35, %c0_36], %41 {strides = array<i32>} : memref<1x3x8x128xf32, #tpu.memory_space<vmem>>, vector<1x3x8x128xf32>,
    } else {
    }
    %c0 = arith.constant 0 : index
    %c0_1 = arith.constant 0 : index
    %3 = vector.load %arg2[%c0, %c0_1] : memref<16x128xf32, #tpu.memory_space<vmem>>, vector<16x128xf32>
    %c0_2 = arith.constant 0 : index
    %c0_3 = arith.constant 0 : index
    %4 = vector.load %arg3[%c0_2, %c0_3] : memref<16x128xbf16, #tpu.memory_space<vmem>>, vector<16x128xbf16>
    %5 = arith.extf %4 : vector<16x128xbf16> to vector<16x128xf32>
    %6 = vector.shape_cast %3 : vector<16x128xf32> to vector<2x8x128xf32>
    %7 = vector.shape_cast %5 : vector<16x128xf32> to vector<2x8x128xf32>
    %8 = arith.mulf %6, %7 : vector<2x8x128xf32>
    %cst = arith.constant dense<0.000000e+00> : vector<8x128xf32>
    %9 = vector.multi_reduction <add>, %8, %cst [0] : vector<2x8x128xf32> to vector<8x128xf32>
    %10 = arith.addf %6, %7 : vector<2x8x128xf32>
    %cst_4 = arith.constant dense<0.000000e+00> : vector<8x128xf32>
    %11 = vector.multi_reduction <add>, %10, %cst_4 [0] : vector<2x8x128xf32> to vector<8x128xf32>
    %cst_5 = arith.constant 5.000000e-01 : f32
    %12 = vector.broadcast %cst_5 : f32 to vector<2x8x128xf32>
    %13 = arith.cmpf ogt, %7, %12 : vector<2x8x128xf32>
    %cst_6 = arith.constant 1.000000e+00 : f32
    %14 = vector.broadcast %cst_6 : f32 to vector<2x8x128xf32>
    %15 = arith.subf %14, %6 : vector<2x8x128xf32>
    %16 = arith.select %13, %6, %15 : vector<2x8x128xi1>, vector<2x8x128xf32>
    %17 = math.log %16 : vector<2x8x128xf32>
    %cst_7 = arith.constant -1.000000e+02 : f32
    %18 = vector.broadcast %cst_7 : f32 to vector<2x8x128xf32>
    %19 = arith.maximumf %17, %18 : vector<2x8x128xf32>
    %cst_8 = arith.constant 0.000000e+00 : f32
    %20 = vector.broadcast %cst_8 : f32 to vector<2x8x128xf32>
    %21 = arith.subf %20, %19 : vector<2x8x128xf32>
    %cst_9 = arith.constant dense<0.000000e+00> : vector<8x128xf32>
    %22 = vector.multi_reduction <add>, %21, %cst_9 [0] : vector<2x8x128xf32> to vector<8x128xf32>
    %c0_10 = arith.constant 0 : index
    %c0_11 = arith.constant 0 : index
    %c0_12 = arith.constant 0 : index
    %c0_13 = arith.constant 0 : index
    %23 = vector.load %arg4[%c0_10, %c0_11, %c0_12, %c0_13] : memref<1x3x8x128xf32, #tpu.memory_space<vmem>>, vector<1x1x8x128xf32>
    %24 = vector.shape_cast %23 : vector<1x1x8x128xf32> to vector<8x128xf32>
    %25 = arith.addf %24, %9 : vector<8x128xf32>
    %c0_14 = arith.constant 0 : index
    %c0_15 = arith.constant 0 : index
    %c0_16 = arith.constant 0 : index
    %c0_17 = arith.constant 0 : index
    %26 = vector.load %arg4[%c0_14, %c0_15, %c0_16, %c0_17] : memref<1x3x8x128xf32, #tpu.memory_space<vmem>>, vector<1x1x8x128xf32>
    %27 = vector.shape_cast %26 : vector<1x1x8x128xf32> to vector<8x128xf32>
    %28 = vector.shape_cast %25 : vector<8x128xf32> to vector<1x1x8x128xf32>
    tpu.vector_store %arg4[%c0_14, %c0_15, %c0_16, %c0_17], %28 {strides = array<i32>} : memref<1x3x8x128xf32, #tpu.memory_space<vmem>>, vector<1x1x8x128xf32>,
    %c0_18 = arith.constant 0 : index
    %c1 = arith.constant 1 : index
    %c0_19 = arith.constant 0 : index
    %c0_20 = arith.constant 0 : index
    %29 = vector.load %arg4[%c0_18, %c1, %c0_19, %c0_20] : memref<1x3x8x128xf32, #tpu.memory_space<vmem>>, vector<1x1x8x128xf32>
    %30 = vector.shape_cast %29 : vector<1x1x8x128xf32> to vector<8x128xf32>
    %31 = arith.addf %30, %11 : vector<8x128xf32>
    %c0_21 = arith.constant 0 : index
    %c1_22 = arith.constant 1 : index
    %c0_23 = arith.constant 0 : index
    %c0_24 = arith.constant 0 : index
    %32 = vector.load %arg4[%c0_21, %c1_22, %c0_23, %c0_24] : memref<1x3x8x128xf32, #tpu.memory_space<vmem>>, vector<1x1x8x128xf32>
    %33 = vector.shape_cast %32 : vector<1x1x8x128xf32> to vector<8x128xf32>
    %34 = vector.shape_cast %31 : vector<8x128xf32> to vector<1x1x8x128xf32>
    tpu.vector_store %arg4[%c0_21, %c1_22, %c0_23, %c0_24], %34 {strides = array<i32>} : memref<1x3x8x128xf32, #tpu.memory_space<vmem>>, vector<1x1x8x128xf32>,
    %c0_25 = arith.constant 0 : index
    %c2 = arith.constant 2 : index
    %c0_26 = arith.constant 0 : index
    %c0_27 = arith.constant 0 : index
    %35 = vector.load %arg4[%c0_25, %c2, %c0_26, %c0_27] : memref<1x3x8x128xf32, #tpu.memory_space<vmem>>, vector<1x1x8x128xf32>
    %36 = vector.shape_cast %35 : vector<1x1x8x128xf32> to vector<8x128xf32>
    %37 = arith.addf %36, %22 : vector<8x128xf32>
    %c0_28 = arith.constant 0 : index
    %c2_29 = arith.constant 2 : index
    %c0_30 = arith.constant 0 : index
    %c0_31 = arith.constant 0 : index
    %38 = vector.load %arg4[%c0_28, %c2_29, %c0_30, %c0_31] : memref<1x3x8x128xf32, #tpu.memory_space<vmem>>, vector<1x1x8x128xf32>
    %39 = vector.shape_cast %38 : vector<1x1x8x128xf32> to vector<8x128xf32>
    %40 = vector.shape_cast %37 : vector<8x128xf32> to vector<1x1x8x128xf32>
    tpu.vector_store %arg4[%c0_28, %c2_29, %c0_30, %c0_31], %40 {strides = array<i32>} : memref<1x3x8x128xf32, #tpu.memory_space<vmem>>, vector<1x1x8x128xf32>,
    return
  }
  func.func @transform_0(%arg0: i32, %arg1: i32) -> (i32, i32) {
    %c1_i32 = arith.constant 1 : i32
    %0 = arith.muli %arg0, %c1_i32 : i32
    %1 = arith.addi %0, %arg1 : i32
    %c0_i32 = arith.constant 0 : i32
    %c0_i32_0 = arith.constant 0 : i32
    return %1, %c0_i32 : i32, i32
  }
  func.func @transform_1(%arg0: i32, %arg1: i32) -> (i32, i32) {
    %c1_i32 = arith.constant 1 : i32
    %0 = arith.muli %arg0, %c1_i32 : i32
    %1 = arith.addi %0, %arg1 : i32
    %c0_i32 = arith.constant 0 : i32
    %c0_i32_0 = arith.constant 0 : i32
    return %1, %c0_i32 : i32, i32
  }
  func.func @transform_2(%arg0: i32, %arg1: i32) -> (i32, i32, i32, i32) {
    %c0_i32 = arith.constant 0 : i32
    %c0_i32_0 = arith.constant 0 : i32
    %c0_i32_1 = arith.constant 0 : i32
    %c0_i32_2 = arith.constant 0 : i32
    return %arg0, %c0_i32, %c0_i32_0, %c0_i32_1 : i32, i32, i32, i32
  }
}

</mosaic_0001>

<bundles_post_ra>
// kernel: dice_ce_loss.1
= control target key start
LH: loop header
LB: loop body
LE: loop exit
PB: predicated region body
PF: predicated region fallthrough
CT: control target
= control target key end

     0   :  { %s403_s9 = smov 0   ;;  %s405_s10 = smov 0   ;;  %s439_s0 = inlined_call_operand.vmem [shape: f32[32,128], index: 0, kind: input, shape index: {}]   ;;  %s440_s1 = inlined_call_operand.vmem [shape: bf16[32,128], index: 1, kind: input, shape index: {}]   ;;  %s441_s2 = inlined_call_operand.vmem [shape: f32[2,3,8,128], index: 2, kind: output, shape index: {}]  }
   0x1   :  { %s407_s11 = smov 0  }
   0x2 LB: > { %s24_s12 = sadd.s32 1, %s382_s10  ;;  %p318_p0 = scmp.ge.s32.totalorder %s386_s11, 1  ;;  %s386_s11 = sphi %s407_s11, %s12_s11   ;;  %s382_s10 = sphi %s405_s10, %s443_s10   ;;  %s378_s9 = sphi %s403_s9, %s442_s9  }
   0x3   : > { %p26_p1 = scmp.ge.s32.totalorder %s24_s12, 2  ;;  %p144_p2 = scmp.lt.s32.totalorder %s386_s11, 3 }
   0x5   : > { %s445_s12 = smov (%p26_p1, %s24_s12), 0  ;;  %p145_p3 = pnand %p318_p0, %p144_p2 }
   0x6   : > { %p189_p4 = scmp.lt.s32.totalorder (!%p145_p3), %s378_s9, 1  ;;  %s319_s13 = sshll.u32 (!%p145_p3), %s378_s9, 1 }
   0x7   : > { %148 = sbr.rel (%p145_p3) target bundleno = 45 (0x2d), region = 28  ;;  %p175_p5 = scmp.lt.s32.totalorder (!%p145_p3), %s319_s13, 3 }
   0xe   : > { %s447_s13 = smov (!%p175_p5, %s319_s13), 3  ;;  %s449_s9 = smov (!%p189_p4, %s378_s9), 1 }
   0xf   : > { %s320_s14 = sshll.u32 %s447_s13, 3  ;;  %s322_s15 = sshll.u32 %s447_s13, 2 }
  0x10   : > { %s178_s18 = scalar_lea.vmem %s439_s0, %s320_s14  ;;  %s186_s21 = scalar_lea.vmem %s440_s1, %s322_s15 }
  0x11   : > { %v201_v0 = vld [vmem:[%s178_s18] sm:$0xff]  ;;  %v202_v1 = vld [vmem:[%s178_s18 + $0x8] sm:$0xff]  ;;  %s334_s22 = smul.u32 24, %s449_s9 }
  0x12   : > { %v331_v2 = vld [vmem:[%s186_s21] sm:$0xff]   ;;  %v215_v5 = vsub.f32 1.0, %v201_v0  ;;  %v216_v6 = vsub.f32 1.0, %v202_v1 }
  0x13   : > { %v332_v3 = vunpack.c.l.bf16 %v331_v2  ;;  %v333_v4 = vunpack.c.h.bf16 %v331_v2  ;;  %s193_s25 = scalar_lea.vmem %s441_s2, %s334_s22 }
  0x15   : > { %v207_v7 = vmul.f32 %v332_v3, %v201_v0  ;;  %v208_v8 = vmul.f32 %v333_v4, %v202_v1  ;;  %v210_v9 = vadd.f32 %v332_v3, %v201_v0  ;;  %v211_v10 = vadd.f32 %v333_v4, %v202_v1 }
  0x16   : > { %vm213_vm0 = vcmp.gt.f32.partialorder %v332_v3, 0.5  ;;  %vm214_vm1 = vcmp.gt.f32.partialorder %v333_v4, 0.5 }
  0x17   : > { %v209_v11 = vadd.f32 %v208_v8, %v207_v7  ;;  %v212_v12 = vadd.f32 %v211_v10, %v210_v9  ;;  %v217_v13 = vsel %vm213_vm0, %v201_v0, %v215_v5  ;;  %v218_v14 = vsel %vm214_vm1, %v202_v1, %v216_v6 }
  0x18   : > { %360 = vlog2.f32 %v217_v13 }
  0x19   : > { %362 = vlog2.f32 %v218_v14  ;;  %230 = vst [vmem:[%s193_s25] sm:$0xff] %v209_v11  ;;  %325 = vst [vmem:[%s193_s25 + $0x8] sm:$0xff] %v212_v12 }
  0x22   : > { %v361_v15 = vpop.eup %360 }
  0x23   : > { %v363_v16 = vpop.eup %362  ;;  %v220_v17 = vmul.f32 0.6931472, %v361_v15 }
  0x24   : > { %v222_v18 = vmul.f32 0.6931472, %v363_v16 }
  0x25   : > { %v223_v19 = vmax.f32 %v220_v17, -100.0 }
  0x26   : > { %v224_v20 = vmax.f32 %v222_v18, -100.0 }
  0x27   : > { %v225_v21 = vsub.f32 0.0, %v223_v19 }
  0x28   : > { %v226_v22 = vsub.f32 0.0, %v224_v20 }
  0x2a   : > { %v227_v23 = vadd.f32 %v226_v22, %v225_v21 }
  0x2c   : > { %327 = vst [vmem:[%s193_s25 + $0x10] sm:$0xff] %v227_v23 }
  0x2d PF: > { %s12_s11 = sadd.s32 1, %s386_s11   ;;  %s442_s9 = smov %s382_s10 }
  0x2e   : > { %p9_p6 = scmp.ge.s32.totalorder %s12_s11, 4   ;;  %s443_s10 = smov %s445_s12 }
  0x30   :  { %11 = sbr.rel (!%p9_p6) target bundleno = 2 (0x2), region = 67 }

</bundles_post_ra>
